<compile_context>
chip_gen: v6e
topology: v6e:2x2x1
jax: 0.10.0
libtpu: 0.0.40
codegen_flags: <defaults>
</compile_context>

<pallas_src>
import functools

import jax
import jax.numpy as jnp
from jax import lax
from jax.experimental import pallas as pl
from jax.experimental.pallas import tpu as pltpu


# ----------------------------- helpers ---------------------------------------

def _round_up(x, m):
    return ((x + m - 1) // m) * m


def _softplus(x):
    # numerically stable softplus: max(x, 0) + log1p(exp(-|x|))
    return jnp.maximum(x, 0.0) + jnp.log1p(jnp.exp(-jnp.abs(x)))


# ----------------------------- kernel ---------------------------------------

def actor_kernel(x_ref,
                 w0_ref, b0_ref,
                 w1_ref, b1_ref,
                 wh_ref, bh_ref,
                 out_ref,
                 *, half, std_min, std_max):
    x = x_ref[...].astype(jnp.float32)

    # hidden layer 0 + ReLU
    h = jnp.dot(x, w0_ref[...], preferred_element_type=jnp.float32) + b0_ref[...]
    h = jnp.maximum(h, 0.0)

    # hidden layer 1 + ReLU
    h = jnp.dot(h, w1_ref[...], preferred_element_type=jnp.float32) + b1_ref[...]
    h = jnp.maximum(h, 0.0)

    # fused (mean | std) head: ONE matmul, packed into 2*half lanes.
    head = jnp.dot(h, wh_ref[...], preferred_element_type=jnp.float32) + bh_ref[...]

    # lanes [0, half) -> tanh (mean head); lanes [half, 2*half) -> clamped softplus (std head)
    lane = lax.broadcasted_iota(jnp.int32, head.shape, dimension=1)
    mean_part = jnp.tanh(head)
    std_part = jnp.clip(_softplus(head), std_min, std_max)
    out_ref[...] = jnp.where(lane < half, mean_part, std_part).astype(out_ref.dtype)


# ----------------------------- param prep (one-time) --------------------------

def fuse_heads(params):
    """One-time fusion of mean/std head weights into a single packed head.

    Returns (wh, bh, half) where the packed head has 2*half lanes
    (half is a 64-multiple, so the total is a 128-lane multiple):
      lanes [0, act)            -> mean head
      lanes [half, half + act)  -> std head
    """
    h1, act = params["wm"].shape
    half = _round_up(max(act, 1), 64)
    width = 2 * half
    wh = jnp.zeros((h1, width), jnp.float32)
    wh = wh.at[:, :act].set(params["wm"].astype(jnp.float32))
    wh = wh.at[:, half:half + act].set(params["ws"].astype(jnp.float32))
    bh = jnp.zeros((1, width), jnp.float32)
    bh = bh.at[:, :act].set(params["bm"].astype(jnp.float32))
    bh = bh.at[:, half:half + act].set(params["bs"].astype(jnp.float32))
    return wh, bh, half


# ----------------------------- forward wrapper --------------------------------

@functools.partial(jax.jit, static_argnames=("act", "half", "max_batch_tile"))
def actor_forward(obs, w0, b0, w1, b1, wh, bh, *, act, half, max_batch_tile=2048):
    """Actor forward pass as a single Pallas kernel.

    obs: [B, obs_size] float32
    Returns (mean, std), each [B, act] float32.
    """
    B, obs_size = obs.shape
    h0 = w0.shape[1]
    h1 = w1.shape[1]
    width = 2 * half

    # One big tile for small batches; up to `max_batch_tile` rows otherwise.
    # No input padding: Pallas handles the ragged last block; garbage rows only
    # affect out-of-bounds output rows which are never written back.
    batch_tile = min(_round_up(B, 8), max_batch_tile)
    grid = (pl.cdiv(B, batch_tile),)

    def const(shape):
        # whole-array block, constant block index -> fetched once, stays resident
        return pl.BlockSpec(shape, lambda i: (0, 0))

    in_specs = [
        pl.BlockSpec((batch_tile, obs_size), lambda i: (i, 0)),   # obs tile (streams)
        const((obs_size, h0)), const((1, h0)),
        const((h0, h1)),       const((1, h1)),
        const((h1, width)),    const((1, width)),
    ]
    out_specs = pl.BlockSpec((batch_tile, width), lambda i: (i, 0))
    out_shape = jax.ShapeDtypeStruct((B, width), jnp.float32)

    kernel = functools.partial(actor_kernel, half=half, std_min=1e-4, std_max=1.0)
    packed = pl.pallas_call(
        kernel,
        grid=grid,
        in_specs=in_specs,
        out_specs=out_specs,
        out_shape=out_shape,
        compiler_params=pltpu.CompilerParams(
            dimension_semantics=("parallel",)),
    )(obs, w0, b0, w1, b1, wh, bh)

    mean = packed[:, :act]
    std = packed[:, half:half + act]
    return mean, std


# ----------------------------- param init ------------------------------------

def init_params(key, obs_size, hidden_sizes, action_size):
    """Deterministic init mimicking nn.Linear's default U(-1/sqrt(fan_in), 1/sqrt(fan_in))."""
    sizes = [obs_size] + list(hidden_sizes)
    params = {}
    keys = jax.random.split(key, 8)

    def linear(kw, kb, fan_in, fan_out):
        bound = 1.0 / jnp.sqrt(fan_in)
        w = jax.random.uniform(kw, (fan_in, fan_out), jnp.float32, -bound, bound)
        b = jax.random.uniform(kb, (1, fan_out), jnp.float32, -bound, bound)
        return w, b

    params["w0"], params["b0"] = linear(keys[0], keys[1], sizes[0], sizes[1])
    params["w1"], params["b1"] = linear(keys[2], keys[3], sizes[1], sizes[2])
    params["wm"], params["bm"] = linear(keys[4], keys[5], sizes[2], action_size)
    params["ws"], params["bs"] = linear(keys[6], keys[7], sizes[2], action_size)
    return params


# ----------------------------- reference (pure JAX) ---------------------------

def actor_ref(obs, p):
    h = jnp.maximum(obs @ p["w0"] + p["b0"], 0.0)
    h = jnp.maximum(h @ p["w1"] + p["b1"], 0.0)
    mean = jnp.tanh(h @ p["wm"] + p["bm"])
    std = jnp.clip(jax.nn.softplus(h @ p["ws"] + p["bs"]), 1e-4, 1.0)
    return mean, std


# ----------------------------- main -------------------------------------------

if __name__ == "__main__":
    key = jax.random.PRNGKey(0)
    k_obs, k_params, k_obs_big = jax.random.split(key, 3)

    B = 16               # batch
    OBS = 24             # observation_space.shape[0]
    HIDDEN = [32, 32]    # hidden_sizes
    ACT = 6              # action_space.shape[0]

    params = init_params(k_params, OBS, HIDDEN, ACT)
    wh, bh, half = fuse_heads(params)   # one-time head fusion (not per call)

    # --- small-batch (RL-typical) path: single tile, grid=(1,) -------------
    obs = jax.random.normal(k_obs, (B, OBS), dtype=jnp.float32)
    mean, std = actor_forward(obs, params["w0"], params["b0"],
                              params["w1"], params["b1"], wh, bh,
                              act=ACT, half=half)
    mean = jax.block_until_ready(mean)
    std = jax.block_until_ready(std)

    mean_r, std_r = actor_ref(obs, params)
    assert mean.shape == (B, ACT) and std.shape == (B, ACT)
    assert jnp.allclose(mean, mean_r, atol=1e-5, rtol=1e-5)
    assert jnp.allclose(std, std_r, atol=1e-5, rtol=1e-5)

    # --- multi-tile ragged path: grid > 1, last tile partial (no jnp.pad) ---
    B2 = 530
    obs2 = jax.random.normal(k_obs_big, (B2, OBS), dtype=jnp.float32)
    mean2, std2 = actor_forward(obs2, params["w0"], params["b0"],
                                params["w1"], params["b1"], wh, bh,
                                act=ACT, half=half, max_batch_tile=256)
    mean2 = jax.block_until_ready(mean2)
    std2 = jax.block_until_ready(std2)

    mean2_r, std2_r = actor_ref(obs2, params)
    assert mean2.shape == (B2, ACT) and std2.shape == (B2, ACT)
    assert jnp.allclose(mean2, mean2_r, atol=1e-5, rtol=1e-5)
    assert jnp.allclose(std2, std2_r, atol=1e-5, rtol=1e-5)

    # Normal(mean, std) distribution object itself has no kernel equivalent;
    # the (mean, std) pair fully determines it.
    print("KERNEL_OK")
</pallas_src>

<mosaic_0001>
module attributes {stable_mosaic.version = 11 : i64} {
  func.func @actor_kernel(%arg0: i32, %arg1: memref<16x24xf32, #tpu.memory_space<vmem>>, %arg2: memref<24x32xf32, #tpu.memory_space<vmem>>, %arg3: memref<1x32xf32, #tpu.memory_space<vmem>>, %arg4: memref<32x32xf32, #tpu.memory_space<vmem>>, %arg5: memref<1x32xf32, #tpu.memory_space<vmem>>, %arg6: memref<32x128xf32, #tpu.memory_space<vmem>>, %arg7: memref<1x128xf32, #tpu.memory_space<vmem>>, %arg8: memref<16x128xf32, #tpu.memory_space<vmem>>) attributes {dimension_semantics = [#tpu.dimension_semantics<parallel>], iteration_bounds = array<i64: 1>, scalar_prefetch = 0 : i64, scratch_operands = 0 : i64, tpu.core_type = #tpu.core_type<tc>, window_params = [{transform_indices = @transform_0, window_bounds = array<i64: 16, 24>}, {pipeline_mode = #tpu.pipeline_mode<synchronous>, transform_indices = @transform_1, window_bounds = array<i64: 24, 32>}, {pipeline_mode = #tpu.pipeline_mode<synchronous>, transform_indices = @transform_2, window_bounds = array<i64: 1, 32>}, {pipeline_mode = #tpu.pipeline_mode<synchronous>, transform_indices = @transform_3, window_bounds = array<i64: 32, 32>}, {pipeline_mode = #tpu.pipeline_mode<synchronous>, transform_indices = @transform_4, window_bounds = array<i64: 1, 32>}, {pipeline_mode = #tpu.pipeline_mode<synchronous>, transform_indices = @transform_5, window_bounds = array<i64: 32, 128>}, {pipeline_mode = #tpu.pipeline_mode<synchronous>, transform_indices = @transform_6, window_bounds = array<i64: 1, 128>}, {transform_indices = @transform_7, window_bounds = array<i64: 16, 128>}]} {
    %c0 = arith.constant 0 : index
    %c0_0 = arith.constant 0 : index
    %0 = vector.load %arg1[%c0, %c0_0] : memref<16x24xf32, #tpu.memory_space<vmem>>, vector<16x24xf32>
    %c0_1 = arith.constant 0 : index
    %c0_2 = arith.constant 0 : index
    %1 = vector.load %arg2[%c0_1, %c0_2] : memref<24x32xf32, #tpu.memory_space<vmem>>, vector<24x32xf32>
    %cst = arith.constant dense<0.000000e+00> : vector<16x32xf32>
    %2 = tpu.matmul %0, %1, %cst {dimension_numbers = #tpu.dot_dimension_numbers<[1], [0], [0], [1], [0, 0, 1, 1], [], []>} : vector<16x24xf32>, vector<24x32xf32>, vector<16x32xf32> -> vector<16x32xf32>
    %c0_3 = arith.constant 0 : index
    %c0_4 = arith.constant 0 : index
    %3 = vector.load %arg3[%c0_3, %c0_4] : memref<1x32xf32, #tpu.memory_space<vmem>>, vector<1x32xf32>
    %4 = vector.broadcast %3 : vector<1x32xf32> to vector<16x32xf32>
    %5 = arith.addf %2, %4 : vector<16x32xf32>
    %cst_5 = arith.constant 0.000000e+00 : f32
    %6 = vector.broadcast %cst_5 : f32 to vector<16x32xf32>
    %7 = arith.maximumf %5, %6 : vector<16x32xf32>
    %c0_6 = arith.constant 0 : index
    %c0_7 = arith.constant 0 : index
    %8 = vector.load %arg4[%c0_6, %c0_7] : memref<32x32xf32, #tpu.memory_space<vmem>>, vector<32x32xf32>
    %cst_8 = arith.constant dense<0.000000e+00> : vector<16x32xf32>
    %9 = tpu.matmul %7, %8, %cst_8 {dimension_numbers = #tpu.dot_dimension_numbers<[1], [0], [0], [1], [0, 0, 1, 1], [], []>} : vector<16x32xf32>, vector<32x32xf32>, vector<16x32xf32> -> vector<16x32xf32>
    %c0_9 = arith.constant 0 : index
    %c0_10 = arith.constant 0 : index
    %10 = vector.load %arg5[%c0_9, %c0_10] : memref<1x32xf32, #tpu.memory_space<vmem>>, vector<1x32xf32>
    %11 = vector.broadcast %10 : vector<1x32xf32> to vector<16x32xf32>
    %12 = arith.addf %9, %11 : vector<16x32xf32>
    %cst_11 = arith.constant 0.000000e+00 : f32
    %13 = vector.broadcast %cst_11 : f32 to vector<16x32xf32>
    %14 = arith.maximumf %12, %13 : vector<16x32xf32>
    %c0_12 = arith.constant 0 : index
    %c0_13 = arith.constant 0 : index
    %15 = vector.load %arg6[%c0_12, %c0_13] : memref<32x128xf32, #tpu.memory_space<vmem>>, vector<32x128xf32>
    %cst_14 = arith.constant dense<0.000000e+00> : vector<16x128xf32>
    %16 = tpu.matmul %14, %15, %cst_14 {dimension_numbers = #tpu.dot_dimension_numbers<[1], [0], [0], [1], [0, 0, 1, 1], [], []>} : vector<16x32xf32>, vector<32x128xf32>, vector<16x128xf32> -> vector<16x128xf32>
    %c0_15 = arith.constant 0 : index
    %c0_16 = arith.constant 0 : index
    %17 = vector.load %arg7[%c0_15, %c0_16] : memref<1x128xf32, #tpu.memory_space<vmem>>, vector<1x128xf32>
    %18 = vector.broadcast %17 : vector<1x128xf32> to vector<16x128xf32>
    %19 = arith.addf %16, %18 : vector<16x128xf32>
    %20 = tpu.iota {dimensions = array<i32: 1>} : vector<16x128xi32>
    %21 = math.tanh %19 : vector<16x128xf32>
    %cst_17 = arith.constant 0.000000e+00 : f32
    %22 = vector.broadcast %cst_17 : f32 to vector<16x128xf32>
    %23 = arith.maximumf %19, %22 : vector<16x128xf32>
    %24 = math.absf %19 : vector<16x128xf32>
    %cst_18 = arith.constant 0.000000e+00 : f32
    %25 = vector.broadcast %cst_18 : f32 to vector<16x128xf32>
    %26 = arith.subf %25, %24 : vector<16x128xf32>
    %27 = math.exp %26 : vector<16x128xf32>
    %28 = math.log1p %27 : vector<16x128xf32>
    %29 = arith.addf %23, %28 : vector<16x128xf32>
    %cst_19 = arith.constant 9.99999974E-5 : f32
    %cst_20 = arith.constant 1.000000e+00 : f32
    %30 = vector.broadcast %cst_19 : f32 to vector<16x128xf32>
    %31 = arith.maximumf %30, %29 : vector<16x128xf32>
    %32 = vector.broadcast %cst_20 : f32 to vector<16x128xf32>
    %33 = arith.minimumf %32, %31 : vector<16x128xf32>
    %c64_i32 = arith.constant 64 : i32
    %34 = vector.broadcast %c64_i32 : i32 to vector<16x128xi32>
    %35 = arith.cmpi slt, %20, %34 : vector<16x128xi32>
    %36 = arith.select %35, %21, %33 : vector<16x128xi1>, vector<16x128xf32>
    %c0_21 = arith.constant 0 : index
    %c0_22 = arith.constant 0 : index
    %37 = vector.load %arg8[%c0_21, %c0_22] : memref<16x128xf32, #tpu.memory_space<vmem>>, vector<16x128xf32>
    tpu.vector_store %arg8[%c0_21, %c0_22], %36 {strides = array<i32>} : memref<16x128xf32, #tpu.memory_space<vmem>>, vector<16x128xf32>,
    return
  }
  func.func @transform_0(%arg0: i32) -> (i32, i32) {
    %c0_i32 = arith.constant 0 : i32
    %c0_i32_0 = arith.constant 0 : i32
    return %arg0, %c0_i32 : i32, i32
  }
  func.func @transform_1(%arg0: i32) -> (i32, i32) {
    %c0_i32 = arith.constant 0 : i32
    %c0_i32_0 = arith.constant 0 : i32
    %c0_i32_1 = arith.constant 0 : i32
    return %c0_i32, %c0_i32_0 : i32, i32
  }
  func.func @transform_2(%arg0: i32) -> (i32, i32) {
    %c0_i32 = arith.constant 0 : i32
    %c0_i32_0 = arith.constant 0 : i32
    %c0_i32_1 = arith.constant 0 : i32
    return %c0_i32, %c0_i32_0 : i32, i32
  }
  func.func @transform_3(%arg0: i32) -> (i32, i32) {
    %c0_i32 = arith.constant 0 : i32
    %c0_i32_0 = arith.constant 0 : i32
    %c0_i32_1 = arith.constant 0 : i32
    return %c0_i32, %c0_i32_0 : i32, i32
  }
  func.func @transform_4(%arg0: i32) -> (i32, i32) {
    %c0_i32 = arith.constant 0 : i32
    %c0_i32_0 = arith.constant 0 : i32
    %c0_i32_1 = arith.constant 0 : i32
    return %c0_i32, %c0_i32_0 : i32, i32
  }
  func.func @transform_5(%arg0: i32) -> (i32, i32) {
    %c0_i32 = arith.constant 0 : i32
    %c0_i32_0 = arith.constant 0 : i32
    %c0_i32_1 = arith.constant 0 : i32
    return %c0_i32, %c0_i32_0 : i32, i32
  }
  func.func @transform_6(%arg0: i32) -> (i32, i32) {
    %c0_i32 = arith.constant 0 : i32
    %c0_i32_0 = arith.constant 0 : i32
    %c0_i32_1 = arith.constant 0 : i32
    return %c0_i32, %c0_i32_0 : i32, i32
  }
  func.func @transform_7(%arg0: i32) -> (i32, i32) {
    %c0_i32 = arith.constant 0 : i32
    %c0_i32_0 = arith.constant 0 : i32
    return %arg0, %c0_i32 : i32, i32
  }
}

</mosaic_0001>

<bundles_post_ra>
// kernel: actor_forward.1
= control target key start
LH: loop header
LB: loop body
LE: loop exit
PB: predicated region body
PF: predicated region fallthrough
CT: control target
= control target key end

     0   :  { %12 = vsyncpa [#allocation3], 0  ;;  %s664_s0 = inlined_call_operand.hbm [shape: f32[16,24], index: 0, kind: input, shape index: {}]   ;;  %s665_s1 = inlined_call_operand.hbm [shape: f32[24,32], index: 1, kind: input, shape index: {}]   ;;  %s666_s2 = inlined_call_operand.vmem [shape: f32[1,32], index: 2, kind: input, shape index: {}]   ;;  %s667_s3 = inlined_call_operand.hbm [shape: f32[32,32], index: 3, kind: input, shape index: {}]   ;;  %s668_s4 = inlined_call_operand.vmem [shape: f32[1,32], index: 4, kind: input, shape index: {}]   ;;  %s669_s5 = inlined_call_operand.hbm [shape: f32[32,128], index: 5, kind: input, shape index: {}]   ;;  %s670_s6 = inlined_call_operand.vmem [shape: f32[1,128], index: 6, kind: input, shape index: {}]   ;;  %s671_s7 = inlined_call_operand.vmem [shape: f32[16,128], index: 7, kind: output, shape index: {}]  }
   0x1   :  { %13 = vsyncpa [#allocation5], 0 }
   0x2   :  { %14 = vsyncpa [#allocation8], 0  ;;  %s575_s24 = smov [#allocation4]   ;;  %s576_s26 = smov [#allocation2]  }
   0x3   :  { %s32_s25 = sshll.u32 %s575_s24, 4  ;;  %s20_s27 = sshll.u32 %s576_s26, 4  ;;  %s33_s25 = int_to_ptr.vmem [resolvable:$true] %s32_s25  ;;  %s21_s27 = int_to_ptr.vmem [resolvable:$true] %s20_s27 }
   0x4   :  { %s497_s28 = scalar_lea.vmem %s33_s25, 384  ;;  %p502_p1 = scmp.lt.s32.totalorder %s33_s25, %s33_s25 }
   0x5   :  { %p498_p0 = scmp.ne.s32.totalorder %s33_s25, %s497_s28  ;;  %p503_p2 = scmp.lt.s32.totalorder %s497_s28, %s497_s28 }
   0x7   :  { %p504_p3 = por %p503_p2, %p502_p1 }
   0x9   :  { %p505_p4 = pnand %p504_p3, %p498_p0 }
   0xb   :  { %508 = shalt.err (!%p505_p4)
}
   0xc   :  { %s577_s29 = smov 128   ;;  %s578_s30 = smov 8  }
   0xd   :  { %38 = dma.hbm_to_vmem [thread:$0]  %s665_s1, 384, %s33_s25, [#allocation5], %s577_s29, %s577_s29, %s578_s30  }
   0xe   :  { %s517_s10 = scalar_lea.vmem %s21_s27, 256  ;;  %p522_p6 = scmp.lt.s32.totalorder %s21_s27, %s21_s27 }
   0xf   :  { %p518_p5 = scmp.ne.s32.totalorder %s21_s27, %s517_s10  ;;  %p523_p7 = scmp.lt.s32.totalorder %s517_s10, %s517_s10 }
  0x11   :  { %p524_p8 = por %p523_p7, %p522_p6 }
  0x13   :  { %p525_p9 = pnand %p524_p8, %p518_p5 }
  0x15   :  { %528 = shalt.err (!%p525_p9)
}
  0x16   :  { %26 = dma.hbm_to_vmem [thread:$0]  %s664_s0, 256, %s21_s27, [#allocation3], %s577_s29, %s577_s29, %s578_s30  }
  0x17   :  { %s579_s13 = smov [#allocation6]   ;;  %s580_s15 = smov [#allocation7]  }
  0x18   :  { %s46_s14 = sshll.u32 %s579_s13, 4  ;;  %s60_s16 = sshll.u32 %s580_s15, 4  ;;  %s47_s14 = int_to_ptr.vmem [resolvable:$true] %s46_s14  ;;  %s61_s16 = int_to_ptr.vmem [resolvable:$true] %s60_s16 }
  0x19   :  { %s537_s1 = scalar_lea.vmem %s47_s14, 512  ;;  %p542_p11 = scmp.lt.s32.totalorder %s47_s14, %s47_s14 }
  0x1a   :  { %p538_p10 = scmp.ne.s32.totalorder %s47_s14, %s537_s1  ;;  %p543_p12 = scmp.lt.s32.totalorder %s537_s1, %s537_s1 }
  0x1c   :  { %p544_p13 = por %p543_p12, %p542_p11 }
  0x1e   :  { %p545_p0 = pnand %p544_p13, %p538_p10 }
  0x20   :  { %548 = shalt.err (!%p545_p0)
}
  0x21   :  { %52 = dma.hbm_to_vmem [thread:$0]  %s667_s3, 512, %s47_s14, [#allocation5], %s577_s29, %s577_s29, %s578_s30  }
  0x22   :  { %s557_s0 = scalar_lea.vmem %s61_s16, 512  ;;  %p562_p2 = scmp.lt.s32.totalorder %s61_s16, %s61_s16 }
  0x23   :  { %p558_p1 = scmp.ne.s32.totalorder %s61_s16, %s557_s0  ;;  %p563_p3 = scmp.lt.s32.totalorder %s557_s0, %s557_s0 }
  0x25   :  { %p564_p4 = por %p563_p3, %p562_p2 }
  0x27   :  { %p565_p5 = pnand %p564_p4, %p558_p1 }
  0x29   :  { %568 = shalt.err (!%p565_p5)
}
  0x2a   :  { %66 = dma.hbm_to_vmem [thread:$0]  %s669_s5, 512, %s61_s16, [#allocation8], %s577_s29, %s577_s29, %s578_s30  }
  0x2b   :  { %569 = dma.done.wait [#allocation3], 256  }
  0x2c   :  { %570 = vsyncadd [#allocation3], 4294967040 }
  0x2d   :  { %571 = dma.done.wait [#allocation5], 896  }
  0x2e   :  { %572 = vsyncadd [#allocation5], 4294966400 }
  0x2f   :  { %573 = dma.done.wait [#allocation8], 512  }
  0x30   :  { %574 = vsyncadd [#allocation8], 4294966784  ;;  %vm93_vm0 = vcmask 195584   ;;  %v85_v0 = vld [vmem:[#allocation4 + $0x10] sm:$0xff]  ;;  %v84_v1 = vld [vmem:[#allocation4 + $0x8] sm:$0xff]  ;;  %vm188_vm1 = vcmask 261120   ;;  %v364_v46 = vlaneseq }
  0x31   :  { %440 = vmatprep.subr.mxu0 %v85_v0  ;;  %v81_v2 = vld [vmem:[#allocation2] sm:$0xff]  ;;  %v83_v3 = vld [vmem:[#allocation4] sm:$0xff]  ;;  %v82_v4 = vld [vmem:[#allocation2 + $0x8] sm:$0xff] }
  0x32   :  { %441 = vmatpush3.msra.mxu0 %v85_v0  ;;  %446 = vmatprep.mubr.msk.f32.mxu0 %vm93_vm0, %v81_v2  ;;  %v180_v5 = vld [vmem:[#allocation6 + $0x18] sm:$0xff]  ;;  %v179_v6 = vld [vmem:[#allocation6 + $0x10] sm:$0xff]  ;;  %v178_v7 = vld [vmem:[#allocation6 + $0x8] sm:$0xff]  ;;  %v365_v54 = vand.u32 127, %v364_v46 }
  0x33   :  { %442 = vmatprep.subr.mxu0 %v84_v1  ;;  %449 = vmatprep.subr.mxu1 %v180_v5  ;;  %v177_v8 = vld [vmem:[#allocation6] sm:$0xff]  ;;  %v414_v9 = vld [vmem:[%s666_s2] ss:$0 sm:$0xff]  ;;  %v274_v17 = vld [vmem:[#allocation7 + $0x10] sm:$0xff] }
  0x34   :  { %443 = vmatpush3.msra.mxu0 %v84_v1  ;;  %450 = vmatpush3.msra.mxu1 %v180_v5  ;;  %v275_v16 = vld [vmem:[#allocation7 + $0x18] sm:$0xff]  ;;  %v273_v18 = vld [vmem:[#allocation7 + $0x8] sm:$0xff]  ;;  %v272_v19 = vld [vmem:[#allocation7] sm:$0xff]  ;;  %vm402_vm4 = vcmp.lt.s32.totalorder %v365_v54, 64 }
  0x35   :  { %444 = vmatprep.subr.mxu0 %v83_v3  ;;  %451 = vmatprep.subr.mxu1 %v179_v6  ;;  %v417_v20 = vld [vmem:[%s668_s4] ss:$0 sm:$0xff] }
  0x36   :  { %445 = vmatpush3.msra.mxu0 %v83_v3  ;;  %452 = vmatpush3.msra.mxu1 %v179_v6  ;;  %v420_v27 = vld [vmem:[%s670_s6] ss:$0 sm:$0xff] }
  0x37   :  { %447 = vmatmul.mubr.msk.f32.vlgmr.msra.gmra.mxu0 %vm93_vm0, %v82_v4  ;;  %453 = vmatprep.subr.mxu1 %v178_v7 }
  0x38   :  { %454 = vmatpush3.msra.mxu1 %v178_v7  ;;  %460 = vmatprep.subr.mxu0 %v275_v16 }
  0x39   :  { %455 = vmatprep.subr.mxu1 %v177_v8  ;;  %461 = vmatpush3.msra.mxu0 %v275_v16 }
  0x3a   :  { %456 = vmatpush3.msra.mxu1 %v177_v8  ;;  %462 = vmatprep.subr.mxu0 %v274_v17 }
  0x3b   :  { %463 = vmatpush3.msra.mxu0 %v274_v17 }
  0x3c   :  { %464 = vmatprep.subr.mxu0 %v273_v18 }
  0x3d   :  { %465 = vmatpush3.msra.mxu0 %v273_v18 }
  0x3e   :  { %466 = vmatprep.subr.mxu0 %v272_v19 }
  0x3f   :  { %467 = vmatpush3.msra.mxu0 %v272_v19 }
  0xf7   :  { %v448_v10 = vpop.f32.mrf.mxu0 }
  0xf8   :  { %v172_v11 = vadd.f32 %v448_v10, %v414_v9 }
  0xf9   :  { %v166_v12 = vpop.f32.mrf.mxu0 }
  0xfa   :  { %v167_v13 = vadd.f32 %v414_v9, %v166_v12  ;;  %v176_v15 = vmax.f32 %v172_v11, 0.0 }
  0xfc   :  { %v175_v14 = vmax.f32 %v167_v13, 0.0 }
  0xfe   :  { %457 = vmatprep.mubr.msk.f32.mxu1 %vm188_vm1, %v175_v14 }
  0xff   :  { %458 = vmatmul.mubr.msk.f32.vlgmr.msra.gmra.mxu1 %vm188_vm1, %v176_v15 }
 0x1bf   :  { %v459_v21 = vpop.f32.mrf.mxu1 }
 0x1c0   :  { %v267_v22 = vadd.f32 %v459_v21, %v417_v20 }
 0x1c1   :  { %v261_v23 = vpop.f32.mrf.mxu1 }
 0x1c2   :  { %v262_v24 = vadd.f32 %v417_v20, %v261_v23  ;;  %v271_v26 = vmax.f32 %v267_v22, 0.0 }
 0x1c4   :  { %v270_v25 = vmax.f32 %v262_v24, 0.0 }
 0x1c6   :  { %468 = vmatprep.mubr.msk.f32.mxu0 %vm188_vm1, %v270_v25 }
 0x1c7   :  { %469 = vmatmul.mubr.msk.f32.vlgmr.msra.gmra.mxu0 %vm188_vm1, %v271_v26 }
 0x287   :  { %v470_v28 = vpop.f32.mrf.mxu0 }
 0x288   :  { %v361_v29 = vadd.f32 %v470_v28, %v420_v27 }
 0x289   :  { %v355_v30 = vpop.f32.mrf.mxu0 }
 0x28a   :  { %v371_v31 = vand.u32 2147483647, %v361_v29  ;;  %v356_v32 = vadd.f32 %v420_v27, %v355_v30  ;;  %v369_v53 = vmax.f32 %v361_v29, 0.0 }
 0x28c   :  { %v373_v33 = vsub.f32 0.0, %v371_v31  ;;  %v370_v34 = vand.u32 2147483647, %v356_v32  ;;  %v368_v59 = vmax.f32 %v356_v32, 0.0 }
 0x28e   :  { %v376_v35 = vmul.f32 1.442695, %v373_v33  ;;  %v372_v36 = vsub.f32 0.0, %v370_v34 }
 0x290   :  { %477 = vpow2.f32 %v376_v35  ;;  %v374_v37 = vmul.f32 1.442695, %v372_v36 }
 0x292   :  { %479 = vpow2.f32 %v374_v37 }
 0x29d   :  { %v478_v38 = vpop.eup %477 }
 0x29e   :  { %v387_v39 = vadd.f32 1.0, %v478_v38  ;;  %v390_v42 = vmul.f32 -0.5, %v478_v38  ;;  %v393_v45 = vand.u32 2147483647, %v478_v38 }
 0x29f   :  { %v480_v40 = vpop.eup %479 }
 0x2a0   :  { %481 = vlog2.f32 %v387_v39  ;;  %v378_v41 = vadd.f32 1.0, %v480_v40  ;;  %v381_v43 = vmul.f32 -0.5, %v480_v40  ;;  %v391_v44 = vadd.f32 1.0, %v390_v42 }
 0x2a1   :  { %v384_v49 = vand.u32 2147483647, %v480_v40  ;;  %vm394_vm2 = vcmp.lt.f32.partialorder %v393_v45, 0.0004427343 }
 0x2a2   :  { %483 = vlog2.f32 %v378_v41  ;;  %v382_v47 = vadd.f32 1.0, %v381_v43  ;;  %v392_v51 = vmul.f32 %v478_v38, %v391_v44 }
 0x2a3   :  { %485 = vtanh.f32 %v361_v29  ;;  %vm385_vm3 = vcmp.lt.f32.partialorder %v384_v49, 0.0004427343 }
 0x2a4   :  { %487 = vtanh.f32 %v356_v32  ;;  %v383_v57 = vmul.f32 %v480_v40, %v382_v47 }
 0x2ad   :  { %v482_v48 = vpop.eup %481 }
 0x2ae   :  { %v389_v50 = vmul.f32 0.6931472, %v482_v48 }
 0x2af   :  { %v484_v52 = vpop.eup %483 }
 0x2b0   :  { %v395_v55 = vsel %vm394_vm2, %v392_v51, %v389_v50  ;;  %v380_v56 = vmul.f32 0.6931472, %v484_v52  ;;  %v486_v1 = vpop.eup %485 }
 0x2b1   :  { %v397_v58 = vadd.f32 %v395_v55, %v369_v53  ;;  %v488_v4 = vpop.eup %487 }
 0x2b2   :  { %v386_v60 = vsel %vm385_vm3, %v383_v57, %v380_v56 }
 0x2b3   :  { %v399_v61 = vmax.f32 %v397_v58, 0.0001  ;;  %v396_v62 = vadd.f32 %v386_v60, %v368_v59 }
 0x2b5   :  { %v401_v63 = vmin.f32 %v399_v61, 1.0  ;;  %v398_v0 = vmax.f32 %v396_v62, 0.0001 }
 0x2b7   :  { %v404_v2 = vsel %vm402_vm4, %v486_v1, %v401_v63  ;;  %v400_v3 = vmin.f32 %v398_v0, 1.0 }
 0x2b8   :  { %406 = vst [vmem:[%s671_s7 + $0x8] sm:$0xff] %v404_v2 }
 0x2b9   :  { %v403_v5 = vsel %vm402_vm4, %v488_v4, %v400_v3 }
 0x2ba   :  { %405 = vst [vmem:[%s671_s7] sm:$0xff] %v403_v5 }
 0x2bb   :  { %411 = vsyncpa [#allocation3], 1 }
 0x2bc   :  { %412 = vsyncpa [#allocation5], 1 }
 0x2bd   :  { %413 = vsyncpa [#allocation8], 1 }

</bundles_post_ra>
